<compile_context>
chip_gen: v5e
topology: v5e:2x2
jax: 0.10.0
libtpu: 0.0.40
codegen_flags: <defaults>
</compile_context>

<pallas_src>
import functools

import jax
import jax.numpy as jnp
import numpy as np
from jax.experimental import pallas as pl
from jax.experimental.pallas import tpu as pltpu

_LOG_TWO_PI = float(np.log(2.0 * np.pi))


def actor_kernel(obs_ref, w1_ref, b1_ref, w2_ref, b2_ref, w3_ref, b3_ref,
                 action_ref, logprob_ref):
    # obs tile (BM, 3) f32 -> bf16 for the MXU.
    x = obs_ref[...].astype(jnp.bfloat16)

    # Linear(3, 64) + ReLU   (bf16 operands, f32 accumulate / bias / ReLU)
    h1 = jnp.dot(x, w1_ref[...], preferred_element_type=jnp.float32)
    h1 = jnp.maximum(h1 + b1_ref[...], 0.0)                      # (BM, 64) f32

    # Linear(64, 64) + ReLU
    h2 = jnp.dot(h1.astype(jnp.bfloat16), w2_ref[...],
                 preferred_element_type=jnp.float32)
    h2 = jnp.maximum(h2 + b2_ref[...], 0.0)                      # (BM, 64) f32

    # Linear(64, 2)
    action = jnp.dot(h2.astype(jnp.bfloat16), w3_ref[...],
                     preferred_element_type=jnp.float32)
    action = action + b3_ref[...]                                # (BM, 2) f32

    # log_prob = -0.5 * (action^2 + log(2*pi))  (elementwise VPU, fused for free)
    log_prob = -0.5 * (action * action + _LOG_TWO_PI)

    action_ref[...] = action
    logprob_ref[...] = log_prob


def _round_up(x, m):
    return ((x + m - 1) // m) * m


@functools.partial(jax.jit, static_argnames=("tile_b",))
def actor_forward(obs, params, *, tile_b=512):
    """obs: (B, 3) float32 -> (action (B, 2), log_prob (B, 2)), both float32."""
    w1, b1, w2, b2, w3, b3 = params
    B = obs.shape[0]
    bm = min(tile_b, _round_up(max(B, 1), 8))     # sublane-aligned batch tile
    grid = (pl.cdiv(B, bm),)

    # Pre-cast weights to bf16 once (tiny, one-time); biases stay f32.
    w1b = w1.astype(jnp.bfloat16)
    w2b = w2.astype(jnp.bfloat16)
    w3b = w3.astype(jnp.bfloat16)

    const = lambda i: (0, 0)                      # weights resident across steps
    row_tile = lambda i: (i, 0)                   # obs / outputs streamed per tile

    action, log_prob = pl.pallas_call(
        actor_kernel,
        out_shape=(jax.ShapeDtypeStruct((B, 2), jnp.float32),
                   jax.ShapeDtypeStruct((B, 2), jnp.float32)),
        grid=grid,
        in_specs=[
            pl.BlockSpec((bm, 3), row_tile),           # obs
            pl.BlockSpec((3, 64), const),              # w1
            pl.BlockSpec((1, 64), const),              # b1
            pl.BlockSpec((64, 64), const),             # w2
            pl.BlockSpec((1, 64), const),              # b2
            pl.BlockSpec((64, 2), const),              # w3
            pl.BlockSpec((1, 2), const),               # b3
        ],
        out_specs=(pl.BlockSpec((bm, 2), row_tile),    # action
                   pl.BlockSpec((bm, 2), row_tile)),   # log_prob
        compiler_params=pltpu.CompilerParams(
            dimension_semantics=("parallel",)),        # megacore on v7x
    )(obs, w1b, b1, w2b, b2, w3b, b3)

    return action, log_prob


def init_params(key):
    """PyTorch-like Linear init: U(-1/sqrt(fan_in), +1/sqrt(fan_in))."""
    def linear(key, fan_in, fan_out):
        kw, kb = jax.random.split(key)
        bound = 1.0 / np.sqrt(fan_in)
        w = jax.random.uniform(kw, (fan_in, fan_out), jnp.float32, -bound, bound)
        b = jax.random.uniform(kb, (1, fan_out), jnp.float32, -bound, bound)
        return w, b

    k1, k2, k3 = jax.random.split(key, 3)
    w1, b1 = linear(k1, 3, 64)
    w2, b2 = linear(k2, 64, 64)
    w3, b3 = linear(k3, 64, 2)
    return w1, b1, w2, b2, w3, b3


def actor_forward_ref_f32(obs, params):
    """Pure-f32 JAX reference of the PyTorch forward (spec semantics)."""
    w1, b1, w2, b2, w3, b3 = params
    h1 = jnp.maximum(obs @ w1 + b1, 0.0)
    h2 = jnp.maximum(h1 @ w2 + b2, 0.0)
    action = h2 @ w3 + b3
    log_prob = -0.5 * (action ** 2 + jnp.log(2.0 * np.pi * jnp.ones_like(action)))
    return action, log_prob


def actor_forward_ref_bf16(obs, params):
    """Reference matching the kernel's bf16-operand / f32-accumulate arithmetic."""
    w1, b1, w2, b2, w3, b3 = params
    bf = jnp.bfloat16
    h1 = jnp.maximum(jnp.dot(obs.astype(bf), w1.astype(bf),
                             preferred_element_type=jnp.float32) + b1, 0.0)
    h2 = jnp.maximum(jnp.dot(h1.astype(bf), w2.astype(bf),
                             preferred_element_type=jnp.float32) + b2, 0.0)
    action = jnp.dot(h2.astype(bf), w3.astype(bf),
                     preferred_element_type=jnp.float32) + b3
    log_prob = -0.5 * (action ** 2 + _LOG_TWO_PI)
    return action, log_prob


if __name__ == "__main__":
    key = jax.random.PRNGKey(0)
    k_params, k_obs = jax.random.split(key)
    params = init_params(k_params)

    # Small deterministic cases: a tiny single-tile batch and a multi-tile
    # batch (tile_b=128 -> 2 pipelined grid steps).
    for B, tile_b in ((8, 512), (256, 128)):
        obs = jax.random.normal(jax.random.fold_in(k_obs, B), (B, 3), jnp.float32)

        action, log_prob = actor_forward(obs, params, tile_b=tile_b)
        jax.block_until_ready((action, log_prob))

        # Tight check vs. a bf16-matched reference (same arithmetic as kernel).
        a_bf, lp_bf = actor_forward_ref_bf16(obs, params)
        np.testing.assert_allclose(np.asarray(action), np.asarray(a_bf),
                                   rtol=2e-3, atol=2e-3)
        np.testing.assert_allclose(np.asarray(log_prob), np.asarray(lp_bf),
                                   rtol=2e-3, atol=2e-3)

        # Loose check vs. the full-f32 PyTorch-equivalent reference.
        a_f32, lp_f32 = actor_forward_ref_f32(obs, params)
        np.testing.assert_allclose(np.asarray(action), np.asarray(a_f32),
                                   rtol=5e-2, atol=2e-2)
        np.testing.assert_allclose(np.asarray(log_prob), np.asarray(lp_f32),
                                   rtol=5e-2, atol=2e-2)

    print("KERNEL_OK")
</pallas_src>

<mosaic_0001>
module attributes {stable_mosaic.version = 11 : i64} {
  func.func @actor_kernel(%arg0: i32, %arg1: memref<8x3xf32, #tpu.memory_space<vmem>>, %arg2: memref<3x64xbf16, #tpu.memory_space<vmem>>, %arg3: memref<1x64xf32, #tpu.memory_space<vmem>>, %arg4: memref<64x64xbf16, #tpu.memory_space<vmem>>, %arg5: memref<1x64xf32, #tpu.memory_space<vmem>>, %arg6: memref<64x2xbf16, #tpu.memory_space<vmem>>, %arg7: memref<1x2xf32, #tpu.memory_space<vmem>>, %arg8: memref<8x2xf32, #tpu.memory_space<vmem>>, %arg9: memref<8x2xf32, #tpu.memory_space<vmem>>) attributes {dimension_semantics = [#tpu.dimension_semantics<parallel>], iteration_bounds = array<i64: 1>, scalar_prefetch = 0 : i64, scratch_operands = 0 : i64, tpu.core_type = #tpu.core_type<tc>, window_params = [{transform_indices = @transform_0, window_bounds = array<i64: 8, 3>}, {pipeline_mode = #tpu.pipeline_mode<synchronous>, transform_indices = @transform_1, window_bounds = array<i64: 3, 64>}, {pipeline_mode = #tpu.pipeline_mode<synchronous>, transform_indices = @transform_2, window_bounds = array<i64: 1, 64>}, {pipeline_mode = #tpu.pipeline_mode<synchronous>, transform_indices = @transform_3, window_bounds = array<i64: 64, 64>}, {pipeline_mode = #tpu.pipeline_mode<synchronous>, transform_indices = @transform_4, window_bounds = array<i64: 1, 64>}, {pipeline_mode = #tpu.pipeline_mode<synchronous>, transform_indices = @transform_5, window_bounds = array<i64: 64, 2>}, {pipeline_mode = #tpu.pipeline_mode<synchronous>, transform_indices = @transform_6, window_bounds = array<i64: 1, 2>}, {transform_indices = @transform_7, window_bounds = array<i64: 8, 2>}, {transform_indices = @transform_8, window_bounds = array<i64: 8, 2>}]} {
    %c0 = arith.constant 0 : index
    %c0_0 = arith.constant 0 : index
    %0 = vector.load %arg1[%c0, %c0_0] : memref<8x3xf32, #tpu.memory_space<vmem>>, vector<8x3xf32>
    %1 = arith.truncf %0 : vector<8x3xf32> to vector<8x3xbf16>
    %c0_1 = arith.constant 0 : index
    %c0_2 = arith.constant 0 : index
    %2 = vector.load %arg2[%c0_1, %c0_2] : memref<3x64xbf16, #tpu.memory_space<vmem>>, vector<3x64xbf16>
    %cst = arith.constant dense<0.000000e+00> : vector<8x64xf32>
    %3 = tpu.matmul %1, %2, %cst {dimension_numbers = #tpu.dot_dimension_numbers<[1], [0], [0], [1], [0, 0, 1, 1], [], []>} : vector<8x3xbf16>, vector<3x64xbf16>, vector<8x64xf32> -> vector<8x64xf32>
    %c0_3 = arith.constant 0 : index
    %c0_4 = arith.constant 0 : index
    %4 = vector.load %arg3[%c0_3, %c0_4] : memref<1x64xf32, #tpu.memory_space<vmem>>, vector<1x64xf32>
    %5 = vector.broadcast %4 : vector<1x64xf32> to vector<8x64xf32>
    %6 = arith.addf %3, %5 : vector<8x64xf32>
    %cst_5 = arith.constant 0.000000e+00 : f32
    %7 = vector.broadcast %cst_5 : f32 to vector<8x64xf32>
    %8 = arith.maximumf %6, %7 : vector<8x64xf32>
    %9 = arith.truncf %8 : vector<8x64xf32> to vector<8x64xbf16>
    %c0_6 = arith.constant 0 : index
    %c0_7 = arith.constant 0 : index
    %10 = vector.load %arg4[%c0_6, %c0_7] : memref<64x64xbf16, #tpu.memory_space<vmem>>, vector<64x64xbf16>
    %cst_8 = arith.constant dense<0.000000e+00> : vector<8x64xf32>
    %11 = tpu.matmul %9, %10, %cst_8 {dimension_numbers = #tpu.dot_dimension_numbers<[1], [0], [0], [1], [0, 0, 1, 1], [], []>} : vector<8x64xbf16>, vector<64x64xbf16>, vector<8x64xf32> -> vector<8x64xf32>
    %c0_9 = arith.constant 0 : index
    %c0_10 = arith.constant 0 : index
    %12 = vector.load %arg5[%c0_9, %c0_10] : memref<1x64xf32, #tpu.memory_space<vmem>>, vector<1x64xf32>
    %13 = vector.broadcast %12 : vector<1x64xf32> to vector<8x64xf32>
    %14 = arith.addf %11, %13 : vector<8x64xf32>
    %cst_11 = arith.constant 0.000000e+00 : f32
    %15 = vector.broadcast %cst_11 : f32 to vector<8x64xf32>
    %16 = arith.maximumf %14, %15 : vector<8x64xf32>
    %17 = arith.truncf %16 : vector<8x64xf32> to vector<8x64xbf16>
    %c0_12 = arith.constant 0 : index
    %c0_13 = arith.constant 0 : index
    %18 = vector.load %arg6[%c0_12, %c0_13] : memref<64x2xbf16, #tpu.memory_space<vmem>>, vector<64x2xbf16>
    %cst_14 = arith.constant dense<0.000000e+00> : vector<8x2xf32>
    %19 = tpu.matmul %17, %18, %cst_14 {dimension_numbers = #tpu.dot_dimension_numbers<[1], [0], [0], [1], [0, 0, 1, 1], [], []>} : vector<8x64xbf16>, vector<64x2xbf16>, vector<8x2xf32> -> vector<8x2xf32>
    %c0_15 = arith.constant 0 : index
    %c0_16 = arith.constant 0 : index
    %20 = vector.load %arg7[%c0_15, %c0_16] : memref<1x2xf32, #tpu.memory_space<vmem>>, vector<1x2xf32>
    %21 = vector.broadcast %20 : vector<1x2xf32> to vector<8x2xf32>
    %22 = arith.addf %19, %21 : vector<8x2xf32>
    %23 = arith.mulf %22, %22 : vector<8x2xf32>
    %cst_17 = arith.constant 1.83787704 : f32
    %24 = vector.broadcast %cst_17 : f32 to vector<8x2xf32>
    %25 = arith.addf %23, %24 : vector<8x2xf32>
    %cst_18 = arith.constant -5.000000e-01 : f32
    %26 = vector.broadcast %cst_18 : f32 to vector<8x2xf32>
    %27 = arith.mulf %26, %25 : vector<8x2xf32>
    %c0_19 = arith.constant 0 : index
    %c0_20 = arith.constant 0 : index
    %28 = vector.load %arg8[%c0_19, %c0_20] : memref<8x2xf32, #tpu.memory_space<vmem>>, vector<8x2xf32>
    tpu.vector_store %arg8[%c0_19, %c0_20], %22 {strides = array<i32>} : memref<8x2xf32, #tpu.memory_space<vmem>>, vector<8x2xf32>,
    %c0_21 = arith.constant 0 : index
    %c0_22 = arith.constant 0 : index
    %29 = vector.load %arg9[%c0_21, %c0_22] : memref<8x2xf32, #tpu.memory_space<vmem>>, vector<8x2xf32>
    tpu.vector_store %arg9[%c0_21, %c0_22], %27 {strides = array<i32>} : memref<8x2xf32, #tpu.memory_space<vmem>>, vector<8x2xf32>,
    return
  }
  func.func @transform_0(%arg0: i32) -> (i32, i32) {
    %c0_i32 = arith.constant 0 : i32
    %c0_i32_0 = arith.constant 0 : i32
    return %arg0, %c0_i32 : i32, i32
  }
  func.func @transform_1(%arg0: i32) -> (i32, i32) {
    %c0_i32 = arith.constant 0 : i32
    %c0_i32_0 = arith.constant 0 : i32
    %c0_i32_1 = arith.constant 0 : i32
    return %c0_i32, %c0_i32_0 : i32, i32
  }
  func.func @transform_2(%arg0: i32) -> (i32, i32) {
    %c0_i32 = arith.constant 0 : i32
    %c0_i32_0 = arith.constant 0 : i32
    %c0_i32_1 = arith.constant 0 : i32
    return %c0_i32, %c0_i32_0 : i32, i32
  }
  func.func @transform_3(%arg0: i32) -> (i32, i32) {
    %c0_i32 = arith.constant 0 : i32
    %c0_i32_0 = arith.constant 0 : i32
    %c0_i32_1 = arith.constant 0 : i32
    return %c0_i32, %c0_i32_0 : i32, i32
  }
  func.func @transform_4(%arg0: i32) -> (i32, i32) {
    %c0_i32 = arith.constant 0 : i32
    %c0_i32_0 = arith.constant 0 : i32
    %c0_i32_1 = arith.constant 0 : i32
    return %c0_i32, %c0_i32_0 : i32, i32
  }
  func.func @transform_5(%arg0: i32) -> (i32, i32) {
    %c0_i32 = arith.constant 0 : i32
    %c0_i32_0 = arith.constant 0 : i32
    %c0_i32_1 = arith.constant 0 : i32
    return %c0_i32, %c0_i32_0 : i32, i32
  }
  func.func @transform_6(%arg0: i32) -> (i32, i32) {
    %c0_i32 = arith.constant 0 : i32
    %c0_i32_0 = arith.constant 0 : i32
    %c0_i32_1 = arith.constant 0 : i32
    return %c0_i32, %c0_i32_0 : i32, i32
  }
  func.func @transform_7(%arg0: i32) -> (i32, i32) {
    %c0_i32 = arith.constant 0 : i32
    %c0_i32_0 = arith.constant 0 : i32
    return %arg0, %c0_i32 : i32, i32
  }
  func.func @transform_8(%arg0: i32) -> (i32, i32) {
    %c0_i32 = arith.constant 0 : i32
    %c0_i32_0 = arith.constant 0 : i32
    return %arg0, %c0_i32 : i32, i32
  }
}

</mosaic_0001>

<bundles_post_ra>
// kernel: actor_forward.1
= control target key start
LH: loop header
LB: loop body
LE: loop exit
PB: predicated region body
PF: predicated region fallthrough
CT: control target
= control target key end

     0   :  { %vm40_vm0 = vcmask 1040384   ;;  %vm41_vm1 = vcmask 1041408   ;;  %v230_v1 = vmov 65535   ;;  %vm36_vm2 = vcmask 23552   ;;  %s321_s1 = inlined_call_operand.vmem [shape: bf16[3,64], index: 1, kind: input, shape index: {}]   ;;  %s322_s0 = inlined_call_operand.vmem [shape: f32[8,3], index: 0, kind: input, shape index: {}]   ;;  %s323_s3 = inlined_call_operand.vmem [shape: bf16[64,64], index: 3, kind: input, shape index: {}]   ;;  %s324_s2 = inlined_call_operand.vmem [shape: f32[1,64], index: 2, kind: input, shape index: {}]   ;;  %s325_s4 = inlined_call_operand.vmem [shape: f32[1,64], index: 4, kind: input, shape index: {}]   ;;  %s326_s5 = inlined_call_operand.vmem [shape: bf16[64,2], index: 5, kind: input, shape index: {}]   ;;  %s327_s6 = inlined_call_operand.vmem [shape: f32[1,2], index: 6, kind: input, shape index: {}]   ;;  %s328_s7 = inlined_call_operand.vmem [shape: f32[8,2], index: 7, kind: output, shape index: {0}]   ;;  %s329_s8 = inlined_call_operand.vmem [shape: f32[8,2], index: 8, kind: output, shape index: {1}]  }
   0x1   :  { %v31_v0 = vld [vmem:[%s321_s1] sm:$0x3]  ;;  %v42_v2 = vsel %vm40_vm0, 4294967295, %v230_v1  ;;  %v221_v4 = vld [vmem:[%s323_s3 + $0x18] sm:$0xff]  ;;  %v220_v7 = vld [vmem:[%s323_s3 + $0x10] sm:$0xff]  ;;  %vm98_vm3 = vcmask 523264  }
   0x2   :  { %v29_v3 = vld [vmem:[%s322_s0] sm:$0xff]  ;;  %v43_v5 = vsel %vm41_vm1, %v42_v2, 0  ;;  %106 = vmatpush.bf16.msra.mxu1 %v221_v4  ;;  %v219_v9 = vld [vmem:[%s323_s3 + $0x8] sm:$0xff]  ;;  %v225_v11 = vld [vmem:[%s326_s5 + $0x18] sm:$0xff]  ;;  %vm172_vm4 = vcmask 15360  }
   0x3   :  { %v45_v6 = vand.u32 %v43_v5, %v31_v0  ;;  %v30_v8 = vpack.c.bf16 %v29_v3, %v29_v3  ;;  %v218_v10 = vld [vmem:[%s323_s3] sm:$0xff]  ;;  %160 = vmatpush.bf16.msra.mxu2 %v225_v11  ;;  %v224_v12 = vld [vmem:[%s326_s5 + $0x10] sm:$0xff]  ;;  %v223_v19 = vld [vmem:[%s326_s5 + $0x8] sm:$0xff] }
   0x4   :  { %v227_v13 = vld [vmem:[%s324_s2] ss:$0 sm:$0xff] }
   0x5   :  { %54 = vmatpush.bf16.msra.mxu0 %v45_v6  ;;  %v222_v20 = vld [vmem:[%s326_s5] sm:$0xff] }
   0x6   :  { %107 = vmatpush.bf16.msra.mxu1 %v220_v7  ;;  %v228_v21 = vld [vmem:[%s325_s4] ss:$0 sm:$0xff] }
   0x7   :  { %161 = vmatpush.bf16.msra.mxu2 %v224_v12  ;;  %v229_v27 = vld [vmem:[%s327_s6] ss:$0 sm:$0xff] }
   0x8   :  { %183 = vmatmul.msk.bf16.vlgmr.msra.gmra.mxu0 %vm36_vm2, %v30_v8 }
   0xa   :  { %108 = vmatpush.bf16.msra.mxu1 %v219_v9 }
   0xb   :  { %162 = vmatpush.bf16.msra.mxu2 %v223_v19 }
   0xe   :  { %109 = vmatpush.bf16.msra.mxu1 %v218_v10 }
   0xf   :  { %163 = vmatpush.bf16.msra.mxu2 %v222_v20 }
  0x85   :  { %v56_v14 = vpop.f32.mrf.mxu0 }
  0x86   :  { %v57_v15 = vadd.f32 %v227_v13, %v56_v14 }
  0x88   :  { %v60_v16 = vmax.f32 %v57_v15, 0.0 }
  0x8a   :  { %v61_v17 = vpack.c.bf16 %v60_v16, %v60_v16 }
  0x8c   :  { %200 = vmatmul.msk.bf16.vlgmr.msra.gmra.mxu1 %vm98_vm3, %v61_v17 }
  0x8d   :  { %v58_v18 = vpop.f32.mrf.mxu0 }
 0x109   :  { %v111_v22 = vpop.f32.mrf.mxu1 }
 0x10a   :  { %v112_v23 = vadd.f32 %v228_v21, %v111_v22 }
 0x10c   :  { %v115_v24 = vmax.f32 %v112_v23, 0.0 }
 0x10e   :  { %v116_v25 = vpack.c.bf16 %v115_v24, %v115_v24 }
 0x110   :  { %217 = vmatmul.msk.bf16.vlgmr.msra.gmra.mxu2 %vm98_vm3, %v116_v25 }
 0x111   :  { %v113_v26 = vpop.f32.mrf.mxu1 }
 0x193   :  { %v165_v28 = vpop.f32.mrf.mxu2 }
 0x194   :  { %v166_v29 = vadd.f32 %v229_v27, %v165_v28 }
 0x196   :  { %v169_v30 = vmul.f32 %v166_v29, %v166_v29  ;;  %173 = vst.msk [vmem:[%s328_s7] sm:$0xff] %vm172_vm4, %v166_v29 }
 0x198   :  { %v170_v31 = vadd.f32 1.837877, %v169_v30 }
 0x19a   :  { %v171_v32 = vmul.f32 -0.5, %v170_v31 }
 0x19b   :  { %v167_v33 = vpop.f32.mrf.mxu2 }
 0x19c   :  { %174 = vst.msk [vmem:[%s329_s8] sm:$0xff] %vm172_vm4, %v171_v32 }

</bundles_post_ra>
